<compile_context>
chip_gen: v6e
topology: v6e:2x2x1
jax: 0.10.0
libtpu: 0.0.40
codegen_flags: <defaults>
</compile_context>

<pallas_src>
import jax
import jax.numpy as jnp
from jax.experimental import pallas as pl
from jax.experimental.pallas import tpu as pltpu

LANE = 128                      # base lane width
_TILE_BYTES_CAP = 2 * 1024 * 1024   # per-tile VMEM cap (x4 w/ double buffering)
_SUBLANE_TILE = {1: 32, 2: 16, 4: 8, 8: 8}   # itemsize -> sublane tile


def _copy_kernel(x_ref, o_ref):
    # Pure data movement: identity copy of the current VMEM tile.
    o_ref[...] = x_ref[...]


def _resolve_shape(total, shape):
    """Mimic torch.Tensor.view shape resolution (supports a single -1)."""
    shape = list(shape)
    if shape.count(-1) > 1:
        raise ValueError("only one dimension can be inferred")
    known = 1
    for s in shape:
        if s != -1:
            known *= s
    if -1 in shape:
        if known == 0 or total % known != 0:
            raise ValueError(f"cannot reshape {total} elements into {shape}")
        shape[shape.index(-1)] = total // known
    else:
        if known != total:
            raise ValueError(f"cannot reshape {total} elements into {shape}")
    return tuple(shape)


def _pick_lane_width(total):
    """Widest lane-dense width (multiple of 128) that divides the element count."""
    for k in (32, 16, 8, 4, 2, 1):
        w = LANE * k
        if total % w == 0:
            return w
    return None


def _pallas_copy_2d(flat):
    """Tiled Pallas identity copy of a lane-dense [rows, width] slab."""
    rows, width = flat.shape
    itemsize = jnp.dtype(flat.dtype).itemsize
    sub = _SUBLANE_TILE.get(itemsize, 8)

    if rows < sub:
        # Full-extent block: exempt from the (sublane, 128) divisibility rule.
        tile_rows = rows
    else:
        # Largest tile (multiple of the sublane tile) under the VMEM cap.
        cap_rows = max(sub, (_TILE_BYTES_CAP // (width * itemsize)) // sub * sub)
        tile_rows = min(cap_rows, (rows // sub) * sub)

    grid = (pl.cdiv(rows, tile_rows),)   # partial last block handled by Pallas
    total_bytes = rows * width * itemsize

    return pl.pallas_call(
        _copy_kernel,
        out_shape=jax.ShapeDtypeStruct((rows, width), flat.dtype),
        grid_spec=pltpu.PrefetchScalarGridSpec(
            num_scalar_prefetch=0,
            grid=grid,
            in_specs=[pl.BlockSpec((tile_rows, width), lambda i: (i, 0))],
            out_specs=pl.BlockSpec((tile_rows, width), lambda i: (i, 0)),
        ),
        compiler_params=pltpu.CompilerParams(
            dimension_semantics=("parallel",)
        ),
        cost_estimate=pl.CostEstimate(
            flops=0, transcendentals=0, bytes_accessed=2 * total_bytes
        ),
    )(flat)


class Reshape:
    """JAX/Pallas equivalent of the PyTorch Reshape(nn.Module)."""

    def __init__(self, *args):
        self.shape = list(args)

    def __call__(self, x):
        total = int(x.size)
        out_shape = _resolve_shape(total, self.shape)

        width = _pick_lane_width(total)
        if width is None or total == 0:
            # Element count not divisible by 128: reshape is metadata-only
            # anyway (matches .view on a contiguous tensor exactly).
            return jnp.reshape(x, out_shape)

        rows = total // width
        # Layout-preserving, metadata-only view into the lane-dense slab.
        flat = jnp.reshape(x, (rows, width))
        out_flat = _pallas_copy_2d(flat)
        # Final target shape: metadata-only glue.
        return jnp.reshape(out_flat, out_shape)


if __name__ == "__main__":
    key = jax.random.PRNGKey(0)

    # NCHW-style input, same convention as the PyTorch module's typical use.
    x = jax.random.normal(key, (2, 4, 16, 16), dtype=jnp.float32)
    y = Reshape(2, 4, -1)(x)
    y = jax.block_until_ready(y)
    ref = jnp.reshape(x, (2, 4, 256))
    assert y.shape == (2, 4, 256)
    assert y.dtype == x.dtype
    assert jnp.array_equal(y, ref)

    # bf16 input: exercises the 16-row sublane tile path.
    xb = x.astype(jnp.bfloat16)
    yb = jax.block_until_ready(Reshape(-1, 64)(xb))
    assert jnp.array_equal(yb, jnp.reshape(xb, (-1, 64)))

    # Multi-tile grid with a partial last block (rows=136, tile=128, grid=2).
    x2 = jax.random.normal(key, (17, 128, 256), dtype=jnp.float32)
    y2 = jax.block_until_ready(Reshape(17, -1)(x2))
    assert jnp.array_equal(y2, jnp.reshape(x2, (17, 32768)))

    # Element count not divisible by 128: metadata-only fast path.
    x3 = jax.random.normal(key, (3, 5, 7), dtype=jnp.float32)
    y3 = jax.block_until_ready(Reshape(5, 21)(x3))
    assert jnp.array_equal(y3, jnp.reshape(x3, (5, 21)))

    print("KERNEL_OK")
</pallas_src>

<mosaic_0001>
module attributes {stable_mosaic.version = 11 : i64} {
  func.func @_copy_kernel(%arg0: i32, %arg1: memref<1x2048xf32, #tpu.memory_space<vmem>>, %arg2: memref<1x2048xf32, #tpu.memory_space<vmem>>) attributes {dimension_semantics = [#tpu.dimension_semantics<parallel>], iteration_bounds = array<i64: 1>, scalar_prefetch = 0 : i64, scratch_operands = 0 : i64, tpu.core_type = #tpu.core_type<tc>, window_params = [{transform_indices = @transform_0, window_bounds = array<i64: 1, 2048>}, {transform_indices = @transform_1, window_bounds = array<i64: 1, 2048>}]} {
    %c0 = arith.constant 0 : index
    %c0_0 = arith.constant 0 : index
    %0 = vector.load %arg1[%c0, %c0_0] : memref<1x2048xf32, #tpu.memory_space<vmem>>, vector<1x2048xf32>
    %c0_1 = arith.constant 0 : index
    %c0_2 = arith.constant 0 : index
    %1 = vector.load %arg2[%c0_1, %c0_2] : memref<1x2048xf32, #tpu.memory_space<vmem>>, vector<1x2048xf32>
    tpu.vector_store %arg2[%c0_1, %c0_2], %0 {strides = array<i32>} : memref<1x2048xf32, #tpu.memory_space<vmem>>, vector<1x2048xf32>,
    return
  }
  func.func @transform_0(%arg0: i32) -> (i32, i32) {
    %c0_i32 = arith.constant 0 : i32
    %c0_i32_0 = arith.constant 0 : i32
    return %arg0, %c0_i32 : i32, i32
  }
  func.func @transform_1(%arg0: i32) -> (i32, i32) {
    %c0_i32 = arith.constant 0 : i32
    %c0_i32_0 = arith.constant 0 : i32
    return %arg0, %c0_i32 : i32, i32
  }
}

</mosaic_0001>

<bundles_post_ra>
// kernel: tpu_custom_call.1
= control target key start
LH: loop header
LB: loop body
LE: loop exit
PB: predicated region body
PF: predicated region fallthrough
CT: control target
= control target key end

     0   :  { %6 = vsyncpa [#allocation3], 0  ;;  %s104_s0 = inlined_call_operand.hbm [shape: f32[1,2048], index: 0, kind: input, shape index: {}]   ;;  %s105_s1 = inlined_call_operand.hbm [shape: f32[1,2048], index: 1, kind: output, shape index: {}]  }
   0x1   :  { %7 = vsyncpa [#allocation4], 0  ;;  %s86_s6 = smov [#allocation2]  }
   0x2   :  { %s14_s7 = sshll.u32 %s86_s6, 4  ;;  %s15_s7 = int_to_ptr.vmem [resolvable:$true] %s14_s7 }
   0x3   :  { %s50_s8 = scalar_lea.vmem %s15_s7, 256  ;;  %p55_p1 = scmp.lt.s32.totalorder %s15_s7, %s15_s7 }
   0x4   :  { %p51_p0 = scmp.ne.s32.totalorder %s15_s7, %s50_s8  ;;  %p56_p2 = scmp.lt.s32.totalorder %s50_s8, %s50_s8 }
   0x6   :  { %p57_p3 = por %p56_p2, %p55_p1 }
   0x8   :  { %p58_p4 = pnand %p57_p3, %p51_p0 }
   0xa   :  { %61 = shalt.err (!%p58_p4)
}
   0xb   :  { %17 = dma.hbm_to_vmem [thread:$0]  %s104_s0, 256, %s15_s7, [#allocation3]  }
   0xc   :  { %82 = dma.done.wait [#allocation3], 256  }
   0xd   :  { %83 = vsyncadd [#allocation3], 4294967040  ;;  %s87_s11 = smov [#allocation5]   ;;  %v21_v0 = vld [vmem:[#allocation2] sm:$0xff]  ;;  %v22_v1 = vld [vmem:[#allocation2 + $0x8] sm:$0xff] }
   0xe   :  { %s31_s12 = sshll.u32 %s87_s11, 4  ;;  %23 = vst [vmem:[#allocation5] sm:$0xff] %v21_v0  ;;  %24 = vst [vmem:[#allocation5 + $0x8] sm:$0xff] %v22_v1  ;;  %s32_s12 = int_to_ptr.vmem [resolvable:$true] %s31_s12 }
   0xf   :  { %s62_s13 = scalar_lea.vmem %s32_s12, 256  ;;  %p67_p6 = scmp.lt.s32.totalorder %s32_s12, %s32_s12 }
  0x10   :  { %p63_p5 = scmp.ne.s32.totalorder %s32_s12, %s62_s13  ;;  %p68_p7 = scmp.lt.s32.totalorder %s62_s13, %s62_s13 }
  0x12   :  { %p69_p8 = por %p68_p7, %p67_p6 }
  0x14   :  { %p70_p9 = pnand %p69_p8, %p63_p5 }
  0x16   :  { %73 = shalt.err (!%p70_p9)
}
  0x17   :  { %34 = dma.vmem_to_hbm [thread:$0]  %s32_s12, 256, %s105_s1, [#allocation4]  }
  0x18   :  { %84 = dma.done.wait [#allocation4], 256  }
  0x19   :  { %85 = vsyncadd [#allocation4], 4294967040 }
  0x1a   :  { %38 = vsyncpa [#allocation3], 1 }
  0x1b   :  { %39 = vsyncpa [#allocation4], 1 }

</bundles_post_ra>
